<compile_context>
chip_gen: v7x
topology: tpu7x:2x2x1
jax: 0.10.0
libtpu: 0.0.40
codegen_flags: <defaults>
</compile_context>

<pallas_src>
import math

import jax
import jax.numpy as jnp
import numpy as np
from jax import lax
from jax.experimental import pallas as pl
from jax.experimental.pallas import tpu as pltpu


def _round_up(x, m):
    return ((x + m - 1) // m) * m


def _pairwise_sph_dist_kernel(x_ref, yn_ref, d_ref):
    """x_ref : (TN, E) cutout-embedding tile (native dtype, NOT normalized).
    yn_ref: (C, E)  pre-normalized prompt embeddings (resident across the grid).
    Writes d_ref[c, n] = || normalize(x[n]) - yn[c] ||_2  (float32, lane-dense over n)."""
    x = x_ref[...]                                             # (TN, E)
    yn = yn_ref[...]                                           # (C,  E)

    # Raw inner products on the MXU in a single compute dtype, f32 accumulation.
    x_mm = x if x.dtype == yn.dtype else x.astype(yn.dtype)
    dot = lax.dot_general(yn, x_mm, (((1,), (1,)), ((), ())),
                          preferred_element_type=jnp.float32)  # (C, TN)

    # Per-cutout squared norm in f32, emitted lane-dense as a (1, TN) row via a
    # tiny ones-row MXU matmul (avoids an XLU transpose of a (TN, 1) column).
    xf = x.astype(jnp.float32)
    ones_row = jnp.ones((1, xf.shape[-1]), jnp.float32)
    xx = lax.dot_general(ones_row, xf * xf, (((1,), (1,)), ((), ())),
                         preferred_element_type=jnp.float32)   # (1, TN)

    # F.normalize: x / max(||x||, 1e-12)  ==  x * rsqrt(max(sum_sq, 1e-24)).
    eps2 = jnp.float32(1e-12) * jnp.float32(1e-12)
    inv_norm = lax.rsqrt(jnp.maximum(xx, eps2))                # (1, TN), EUP slot

    # Unit-vector identity: ||xn - yn||^2 = 2 - 2 <xn, yn>, with <xn,yn> = dot/||x||.
    cos = dot * inv_norm                                       # broadcast over C
    d2 = jnp.maximum(2.0 - 2.0 * cos, 0.0)                     # clamp fp roundoff < 0
    d_ref[...] = jnp.sqrt(d2)


def pairwise_spherical_dist(x2d, yn2d, *, tn=1024):
    """x2d: (N, E) raw cutout embeddings; yn2d: (C, E) L2-normalized prompt embeddings.
    Returns (C, N) pairwise L2 distance between normalize(x2d) rows and yn2d rows
    (lane-dense over N)."""
    N, E = x2d.shape
    C, E2 = yn2d.shape
    assert E == E2

    # Pad N up to a lane-aligned multiple so arbitrary N still pipelines the x DMA
    # and the 'parallel' grid axis can split across v7x's two TensorCores.
    n_pad = _round_up(max(N, 1), 128)
    if n_pad // tn < 2 and n_pad >= 256:
        tn = _round_up(pl.cdiv(n_pad, 2), 128)   # prefer >= 2 grid steps when there is work
    tn = min(tn, n_pad)
    n_pad = _round_up(n_pad, tn)
    if n_pad != N:
        x2d = jnp.pad(x2d, ((0, n_pad - N), (0, 0)))

    d = pl.pallas_call(
        _pairwise_sph_dist_kernel,
        out_shape=jax.ShapeDtypeStruct((C, n_pad), jnp.float32),
        grid=(n_pad // tn,),
        in_specs=[
            pl.BlockSpec((tn, E), lambda i: (i, 0)),   # x: tiled over N, double-buffered
            # y: resident across the grid (constant index_map); C*E is tiny so the
            # default second pipeline buffer costs ~nothing in VMEM headroom.
            pl.BlockSpec((C, E), lambda i: (0, 0)),
        ],
        out_specs=pl.BlockSpec((C, tn), lambda i: (0, i)),
        compiler_params=pltpu.CompilerParams(dimension_semantics=("parallel",)),
    )(x2d, yn2d)
    # Padded columns (zero rows -> d = sqrt(2)) MUST be sliced off before any mean.
    return d[:, :N]


def mask_all(pos, size, emb, thresh=0.5):
    # (torch.zeros_like(size[..., 0]).fill_(-inf), 1)
    return jnp.full(size[..., 0].shape, -jnp.inf, dtype=jnp.float32), 1.0


class PromptPallas:
    """Forward-only JAX/Pallas port of pytti Prompt (mask = mask_all)."""

    def __init__(self, embeds, weight, stop, text="", prompt_string="", mask=mask_all):
        self.embeds = embeds                    # (1, C, E)  -- axes ('n','c','i')
        self.weight = weight                    # numeric (parametric_eval of a constant)
        self.stop = stop
        self.text = text
        self.prompt_string = prompt_string
        self.mask = mask
        self.enabled = True
        # Pre-normalize the prompt embeddings once (registered buffer in PyTorch);
        # the per-forward kernel never re-normalizes them.
        C, E = embeds.shape[-2], embeds.shape[-1]
        yf = embeds.reshape(C, E).astype(jnp.float32)
        eps2 = jnp.float32(1e-12) * jnp.float32(1e-12)
        self._embeds_norm = yf * lax.rsqrt(
            jnp.maximum(jnp.sum(yf * yf, axis=-1, keepdims=True), eps2))

    def forward(self, embed, position, size, offset=0.0):
        if (not self.enabled) or self.weight in ["0", 0]:
            return jnp.asarray(offset, jnp.float32), offset

        N, E = embed.shape[0], embed.shape[-1]
        x2d = embed.reshape(N, E)               # native dtype; any cast happens in-kernel

        # One compute dtype for the MXU: bf16 if either input is sub-f32, else f32
        # (f32 keeps the 2-2cos identity safe from cancellation for tiny distances).
        if x2d.dtype == jnp.float32 and self.embeds.dtype == jnp.float32:
            yn = self._embeds_norm
        else:
            yn = self._embeds_norm.astype(jnp.bfloat16)

        # --- Pallas hot path: MXU pairwise spherical chord distance --------- (C, N)
        d = pairwise_spherical_dist(x2d, yn)

        # TODO(synk): arcsin has no Mosaic/Pallas-TPU lowering; this exact elementwise
        # epilogue runs in plain JAX on the tiny (C, N) result.
        # Clamp d/2 to [0, 1]: near-antipodal vectors can give d = 2 + fp-eps.
        dists_raw = jnp.square(jnp.arcsin(jnp.clip(d * 0.5, 0.0, 1.0))) * 2.0 + offset

        weight = jnp.asarray(self.weight, jnp.float32)            # parametric_eval(const)
        stop = jnp.asarray(self.stop, jnp.float32)
        mask_stops, mask_weights = self.mask(position, size, lax.stop_gradient(embed))
        weight = jnp.asarray(mask_weights, jnp.float32) * weight

        sign = jnp.sign(weight)
        sign_offset = jnp.minimum(sign, 0.0)                      # .sign().clamp(max=0)
        dists = dists_raw * sign
        _stops = jnp.maximum(mask_stops + sign_offset, stop)      # only feeds replace_grad's bwd branch
        # replace_grad(x_fwd, x_bwd) returns x_fwd in the forward pass:
        dists = jnp.abs(weight) * dists
        return dists.mean(), dists_raw.mean()


def _reference_forward(embed, embeds, weight, offset):
    """Pure-JAX reference of the PyTorch math for validation."""
    x = embed / jnp.maximum(jnp.linalg.norm(embed, axis=-1, keepdims=True), 1e-12)
    y = embeds / jnp.maximum(jnp.linalg.norm(embeds, axis=-1, keepdims=True), 1e-12)
    d = jnp.linalg.norm(x - y, axis=-1)                            # (N, C)
    dr = jnp.square(jnp.arcsin(d / 2.0)) * 2.0 + offset
    return (jnp.abs(weight) * (dr * jnp.sign(weight))).mean(), dr.mean()


if __name__ == "__main__":
    key = jax.random.PRNGKey(0)
    C, E = 4, 128                               # prompt embeds, embed dim
    k1, k2, k3, k4, k5 = jax.random.split(key, 5)
    embeds = jax.random.normal(k2, (1, C, E), jnp.float32)         # registered buffer

    prompt = PromptPallas(embeds, weight=1.5, stop=float("-inf"),
                          text="demo prompt", prompt_string="demo prompt:1.5")

    # --- small case (N=8): exercises the pad-to-128, single-tile path --------
    N = 8
    embed = jax.random.normal(k1, (N, 1, E), jnp.float32)          # ('n','c','i')
    position = jax.random.uniform(k3, (N, 1, 2), jnp.float32)
    size = jax.random.uniform(k4, (N, 1, 2), jnp.float32) * 0.5

    loss, loss_raw = prompt.forward(embed, position, size, offset=0.0)
    jax.block_until_ready((loss, loss_raw))

    ref_loss, ref_raw = _reference_forward(embed, embeds, 1.5, 0.0)
    assert np.allclose(np.asarray(loss), np.asarray(ref_loss), rtol=1e-4, atol=1e-4)
    assert np.allclose(np.asarray(loss_raw), np.asarray(ref_raw), rtol=1e-4, atol=1e-4)
    assert np.isfinite(np.asarray(loss)) and np.isfinite(np.asarray(loss_raw))

    # --- larger case (N=384): exercises multi-tile grid + padding + slicing --
    N2 = 384
    embed2 = jax.random.normal(k5, (N2, 1, E), jnp.float32)
    position2 = jnp.zeros((N2, 1, 2), jnp.float32)
    size2 = jnp.full((N2, 1, 2), 0.25, jnp.float32)

    loss2, loss_raw2 = prompt.forward(embed2, position2, size2, offset=0.0)
    jax.block_until_ready((loss2, loss_raw2))

    ref_loss2, ref_raw2 = _reference_forward(embed2, embeds, 1.5, 0.0)
    assert np.allclose(np.asarray(loss2), np.asarray(ref_loss2), rtol=1e-4, atol=1e-4)
    assert np.allclose(np.asarray(loss_raw2), np.asarray(ref_raw2), rtol=1e-4, atol=1e-4)
    assert np.isfinite(np.asarray(loss2)) and np.isfinite(np.asarray(loss_raw2))

    print("KERNEL_OK")
</pallas_src>

<mosaic_0001>
module attributes {stable_mosaic.version = 11 : i64} {
  func.func @_pairwise_sph_dist_kernel(%arg0: i32, %arg1: memref<128x128xf32, #tpu.memory_space<vmem>>, %arg2: memref<4x128xf32, #tpu.memory_space<vmem>>, %arg3: memref<4x128xf32, #tpu.memory_space<vmem>>) attributes {dimension_semantics = [#tpu.dimension_semantics<parallel>], iteration_bounds = array<i64: 1>, scalar_prefetch = 0 : i64, scratch_operands = 0 : i64, tpu.core_type = #tpu.core_type<tc>, window_params = [{transform_indices = @transform_0, window_bounds = array<i64: 128, 128>}, {pipeline_mode = #tpu.pipeline_mode<synchronous>, transform_indices = @transform_1, window_bounds = array<i64: 4, 128>}, {transform_indices = @transform_2, window_bounds = array<i64: 4, 128>}]} {
    %c0 = arith.constant 0 : index
    %c0_0 = arith.constant 0 : index
    %0 = vector.load %arg1[%c0, %c0_0] : memref<128x128xf32, #tpu.memory_space<vmem>>, vector<128x128xf32>
    %c0_1 = arith.constant 0 : index
    %c0_2 = arith.constant 0 : index
    %1 = vector.load %arg2[%c0_1, %c0_2] : memref<4x128xf32, #tpu.memory_space<vmem>>, vector<4x128xf32>
    %cst = arith.constant dense<0.000000e+00> : vector<4x128xf32>
    %2 = tpu.matmul %1, %0, %cst {dimension_numbers = #tpu.dot_dimension_numbers<[1], [1], [0], [0], [0, 0, 1, 0], [], []>} : vector<4x128xf32>, vector<128x128xf32>, vector<4x128xf32> -> vector<4x128xf32>
    %cst_3 = arith.constant 1.000000e+00 : f32
    %3 = vector.broadcast %cst_3 : f32 to vector<1x128xf32>
    %4 = arith.mulf %0, %0 : vector<128x128xf32>
    %cst_4 = arith.constant dense<0.000000e+00> : vector<1x128xf32>
    %5 = tpu.matmul %3, %4, %cst_4 {dimension_numbers = #tpu.dot_dimension_numbers<[1], [1], [0], [0], [0, 0, 1, 0], [], []>} : vector<1x128xf32>, vector<128x128xf32>, vector<1x128xf32> -> vector<1x128xf32>
    %cst_5 = arith.constant 9.99999996E-13 : f32
    %cst_6 = arith.constant 9.99999996E-13 : f32
    %6 = arith.mulf %cst_5, %cst_6 : f32
    %7 = vector.broadcast %6 : f32 to vector<1x128xf32>
    %8 = arith.maximumf %5, %7 : vector<1x128xf32>
    %9 = math.rsqrt %8 : vector<1x128xf32>
    %10 = vector.broadcast %9 : vector<1x128xf32> to vector<4x128xf32>
    %11 = arith.mulf %2, %10 : vector<4x128xf32>
    %cst_7 = arith.constant 2.000000e+00 : f32
    %12 = vector.broadcast %cst_7 : f32 to vector<4x128xf32>
    %13 = arith.mulf %12, %11 : vector<4x128xf32>
    %cst_8 = arith.constant 2.000000e+00 : f32
    %14 = vector.broadcast %cst_8 : f32 to vector<4x128xf32>
    %15 = arith.subf %14, %13 : vector<4x128xf32>
    %cst_9 = arith.constant 0.000000e+00 : f32
    %16 = vector.broadcast %cst_9 : f32 to vector<4x128xf32>
    %17 = arith.maximumf %15, %16 : vector<4x128xf32>
    %18 = math.sqrt %17 : vector<4x128xf32>
    %c0_10 = arith.constant 0 : index
    %c0_11 = arith.constant 0 : index
    %19 = vector.load %arg3[%c0_10, %c0_11] : memref<4x128xf32, #tpu.memory_space<vmem>>, vector<4x128xf32>
    tpu.vector_store %arg3[%c0_10, %c0_11], %18 {strides = array<i32>} : memref<4x128xf32, #tpu.memory_space<vmem>>, vector<4x128xf32>,
    return
  }
  func.func @transform_0(%arg0: i32) -> (i32, i32) {
    %c0_i32 = arith.constant 0 : i32
    %c0_i32_0 = arith.constant 0 : i32
    return %arg0, %c0_i32 : i32, i32
  }
  func.func @transform_1(%arg0: i32) -> (i32, i32) {
    %c0_i32 = arith.constant 0 : i32
    %c0_i32_0 = arith.constant 0 : i32
    %c0_i32_1 = arith.constant 0 : i32
    return %c0_i32, %c0_i32_0 : i32, i32
  }
  func.func @transform_2(%arg0: i32) -> (i32, i32) {
    %c0_i32 = arith.constant 0 : i32
    %c0_i32_0 = arith.constant 0 : i32
    return %c0_i32, %arg0 : i32, i32
  }
}

</mosaic_0001>

<bundles_post_ra>
// kernel: tpu_custom_call.1
= control target key start
LH: loop header
LB: loop body
LE: loop exit
PB: predicated region body
PF: predicated region fallthrough
CT: control target
= control target key end

     0   :  { %7 = vsyncpa [#allocation3], 0  ;;  %s558_s0 = inlined_call_operand.hbm [shape: f32[128,128], index: 0, kind: input, shape index: {}]   ;;  %s559_s1 = inlined_call_operand.hbm [shape: f32[4,128], index: 1, kind: input, shape index: {}]   ;;  %s560_s2 = inlined_call_operand.hbm [shape: f32[4,128], index: 2, kind: output, shape index: {}]  }
   0x1   :  { %8 = vsyncpa [#allocation6], 0 }
   0x2   :  { %9 = vsyncpa [#allocation4], 0  ;;  %s482_s9 = smov [#allocation2]   ;;  %s410_s13 = scalar_lea.hbm %s558_s0, 2048 }
   0x3   :  { %s15_s10 = sshll.u32 %s482_s9, 4  ;;  %p411_p0 = scmp.ne.s32.totalorder %s558_s0, %s410_s13  ;;  %s16_s10 = int_to_ptr.vmem [resolvable:$true] %s15_s10 }
   0x4   :  { %p414_p1 = scmp.lt.u32.totalorder %s410_s13, %s558_s0 }
   0x6   :  { %p416_p2 = pnand %p414_p1, %p411_p0 }
   0x8   :  { %419 = shalt.err (!%p416_p2)
}
   0x9   :  { %s420_s18 = scalar_lea.vmem %s16_s10, 2048  ;;  %p425_p4 = scmp.lt.s32.totalorder %s16_s10, %s16_s10 }
   0xa   :  { %p421_p3 = scmp.ne.s32.totalorder %s16_s10, %s420_s18  ;;  %p426_p5 = scmp.lt.s32.totalorder %s420_s18, %s420_s18 }
   0xc   :  { %p427_p6 = por %p426_p5, %p425_p4 }
   0xe   :  { %p428_p7 = pnand %p427_p6, %p421_p3 }
  0x10   :  { %431 = shalt.err (!%p428_p7)
}
  0x11   :  { %s483_s19 = smov 128   ;;  %s484_s20 = smov 8  }
  0x12   :  { %21 = dma.hbm_to_vmem [thread:$0]  %s558_s0, 2048, %s16_s10, [#allocation3], %s483_s19, %s483_s19, %s484_s20  }
  0x13   :  { %s485_s23 = smov [#allocation5]   ;;  %s432_s27 = scalar_lea.hbm %s559_s1, 64 }
  0x14   :  { %s28_s24 = sshll.u32 %s485_s23, 4  ;;  %p433_p8 = scmp.ne.s32.totalorder %s559_s1, %s432_s27  ;;  %s29_s24 = int_to_ptr.vmem [resolvable:$true] %s28_s24 }
  0x15   :  { %p436_p9 = scmp.lt.u32.totalorder %s432_s27, %s559_s1 }
  0x17   :  { %p438_p10 = pnand %p436_p9, %p433_p8 }
  0x19   :  { %441 = shalt.err (!%p438_p10)
}
  0x1a   :  { %s442_s4 = scalar_lea.vmem %s29_s24, 64  ;;  %p447_p12 = scmp.lt.s32.totalorder %s29_s24, %s29_s24 }
  0x1b   :  { %p443_p11 = scmp.ne.s32.totalorder %s29_s24, %s442_s4  ;;  %p448_p13 = scmp.lt.s32.totalorder %s442_s4, %s442_s4 }
  0x1d   :  { %p449_p0 = por %p448_p13, %p447_p12 }
  0x1f   :  { %p450_p1 = pnand %p449_p0, %p443_p11 }
  0x21   :  { %453 = shalt.err (!%p450_p1)
}
  0x22   :  { %31 = dma.hbm_to_vmem [thread:$0]  %s559_s1, 64, %s29_s24, [#allocation6]  }
  0x23   :  { %476 = dma.done.wait [#allocation3], 2048  }
  0x24   :  { %477 = vsyncadd [#allocation3], 4294965248 }
  0x25   :  { %478 = dma.done.wait [#allocation6], 64  }
  0x26   :  { %479 = vsyncadd [#allocation6], 4294967232  ;;  %v486_v0 = vmov 0.0|0.0   ;;  %vm487_vm0 = vmmov 0   ;;  %v488_v1 = vmov 0.0   ;;  %v38_v2 = vld [vmem:[#allocation2] sm:$0xff]  ;;  %v213_v57 = vlaneseq }
  0x27   :  { %373 = vmatprep.subr.bf16.mxu1 %v486_v0  ;;  %349 = vmatprep.subr.bf16.mxu0 %v486_v0  ;;  %v39_v3 = vld [vmem:[#allocation2 + $0x8] sm:$0xff]  ;;  %v125_v4 = vmul.f32 %v38_v2, %v38_v2  ;;  %v40_v7 = vld [vmem:[#allocation2 + $0x10] sm:$0xff]  ;;  %v41_v8 = vld [vmem:[#allocation2 + $0x18] sm:$0xff]  ;;  %v489_v51 = vmov 1.0   ;;  %s490_s1 = smov [#allocation7]  }
  0x28   :  { %346 = vmatprep.mubr.msk.f32.mxu1 %vm487_vm0, %v488_v1  ;;  %311 = vmatprep.mubr.msk.f32.mxu0 %vm487_vm0, %v488_v1  ;;  %v126_v5 = vmul.f32 %v39_v3, %v39_v3  ;;  %v350_v6 = vpack.c.bf16 %v39_v3, %v38_v2  ;;  %v127_v10 = vmul.f32 %v40_v7, %v40_v7  ;;  %v42_v14 = vld [vmem:[#allocation2 + $0x20] sm:$0xff]  ;;  %v43_v15 = vld [vmem:[#allocation2 + $0x28] sm:$0xff]  ;;  %v44_v20 = vld [vmem:[#allocation2 + $0x30] sm:$0xff]  ;;  %v214_v58 = vshrl.u32 %v213_v57, 7  ;;  %s235_s6 = sshll.u32 %s490_s1, 4  ;;  %s236_s6 = int_to_ptr.vmem [resolvable:$true] %s235_s6 }
  0x29   :  { %v128_v11 = vmul.f32 %v41_v8, %v41_v8  ;;  %v353_v12 = vpack.c.bf16 %v41_v8, %v40_v7  ;;  %v129_v16 = vmul.f32 %v42_v14, %v42_v14  ;;  %v130_v17 = vmul.f32 %v43_v15, %v43_v15  ;;  %v45_v21 = vld [vmem:[#allocation2 + $0x38] sm:$0xff]  ;;  %v46_v26 = vld [vmem:[#allocation2 + $0x40] sm:$0xff]  ;;  %v47_v27 = vld [vmem:[#allocation2 + $0x48] sm:$0xff]  ;;  %s454_s7 = scalar_lea.vmem %s236_s6, 64  ;;  %p459_p3 = scmp.lt.s32.totalorder %s236_s6, %s236_s6 }
  0x2a   :  { %v374_v9 = vpack.c.bf16 %v126_v5, %v125_v4  ;;  %351 = vmatpush3.bf16.xpose.msra.mxu0 %v350_v6  ;;  %v356_v18 = vpack.c.bf16 %v43_v15, %v42_v14  ;;  %v131_v22 = vmul.f32 %v44_v20, %v44_v20  ;;  %v132_v23 = vmul.f32 %v45_v21, %v45_v21  ;;  %v48_v32 = vld [vmem:[#allocation2 + $0x50] sm:$0xff]  ;;  %v49_v33 = vld [vmem:[#allocation2 + $0x58] sm:$0xff]  ;;  %v50_v38 = vld [vmem:[#allocation2 + $0x60] sm:$0xff]  ;;  %p455_p2 = scmp.ne.s32.totalorder %s236_s6, %s454_s7  ;;  %p460_p4 = scmp.lt.s32.totalorder %s454_s7, %s454_s7 }
  0x2b   :  { %352 = vmatprep.subr.bf16.mxu0 %v486_v0  ;;  %v377_v13 = vpack.c.bf16 %v128_v11, %v127_v10  ;;  %v380_v19 = vpack.c.bf16 %v130_v17, %v129_v16  ;;  %v359_v24 = vpack.c.bf16 %v45_v21, %v44_v20  ;;  %v133_v28 = vmul.f32 %v46_v26, %v46_v26  ;;  %v51_v39 = vld [vmem:[#allocation2 + $0x68] sm:$0xff]  ;;  %v52_v44 = vld [vmem:[#allocation2 + $0x70] sm:$0xff]  ;;  %v53_v45 = vld [vmem:[#allocation2 + $0x78] sm:$0xff] }
  0x2c   :  { %375 = vmatpush3.bf16.xpose.msra.mxu1 %v374_v9  ;;  %v383_v25 = vpack.c.bf16 %v132_v23, %v131_v22  ;;  %v134_v29 = vmul.f32 %v47_v27, %v47_v27  ;;  %v362_v30 = vpack.c.bf16 %v47_v27, %v46_v26  ;;  %v135_v34 = vmul.f32 %v48_v32, %v48_v32  ;;  %v54_v50 = vld [vmem:[#allocation5] sm:$0xf]  ;;  %p461_p5 = por %p460_p4, %p459_p3 }
  0x2d   :  { %376 = vmatprep.subr.bf16.mxu1 %v486_v0  ;;  %v136_v35 = vmul.f32 %v49_v33, %v49_v33  ;;  %v365_v36 = vpack.c.bf16 %v49_v33, %v48_v32  ;;  %v137_v40 = vmul.f32 %v50_v38, %v50_v38  ;;  %v138_v41 = vmul.f32 %v51_v39, %v51_v39 }
  0x2e   :  { %v386_v31 = vpack.c.bf16 %v134_v29, %v133_v28  ;;  %v368_v42 = vpack.c.bf16 %v51_v39, %v50_v38  ;;  %v139_v46 = vmul.f32 %v52_v44, %v52_v44  ;;  %v140_v47 = vmul.f32 %v53_v45, %v53_v45  ;;  %p462_p6 = pnand %p461_p5, %p455_p2 }
  0x2f   :  { %v389_v37 = vpack.c.bf16 %v136_v35, %v135_v34  ;;  %v392_v43 = vpack.c.bf16 %v138_v41, %v137_v40  ;;  %v371_v48 = vpack.c.bf16 %v53_v45, %v52_v44  ;;  %v215_v59 = vsub.s32 0, %v214_v58 }
  0x30   :  { %v395_v49 = vpack.c.bf16 %v140_v47, %v139_v46 }
  0x32   :  { %354 = vmatpush3.bf16.xpose.msra.mxu0 %v353_v12 }
  0x33   :  { %355 = vmatprep.subr.bf16.mxu0 %v486_v0 }
  0x34   :  { %378 = vmatpush3.bf16.xpose.msra.mxu1 %v377_v13 }
  0x35   :  { %379 = vmatprep.subr.bf16.mxu1 %v486_v0 }
  0x3a   :  { %357 = vmatpush3.bf16.xpose.msra.mxu0 %v356_v18 }
  0x3b   :  { %358 = vmatprep.subr.bf16.mxu0 %v486_v0 }
  0x3c   :  { %381 = vmatpush3.bf16.xpose.msra.mxu1 %v380_v19 }
  0x3d   :  { %382 = vmatprep.subr.bf16.mxu1 %v486_v0 }
  0x42   :  { %360 = vmatpush3.bf16.xpose.msra.mxu0 %v359_v24 }
  0x43   :  { %361 = vmatprep.subr.bf16.mxu0 %v486_v0 }
  0x44   :  { %384 = vmatpush3.bf16.xpose.msra.mxu1 %v383_v25 }
  0x45   :  { %385 = vmatprep.subr.bf16.mxu1 %v486_v0 }
  0x4a   :  { %363 = vmatpush3.bf16.xpose.msra.mxu0 %v362_v30 }
  0x4b   :  { %364 = vmatprep.subr.bf16.mxu0 %v486_v0 }
  0x4c   :  { %387 = vmatpush3.bf16.xpose.msra.mxu1 %v386_v31 }
  0x4d   :  { %388 = vmatprep.subr.bf16.mxu1 %v486_v0 }
  0x52   :  { %366 = vmatpush3.bf16.xpose.msra.mxu0 %v365_v36 }
  0x53   :  { %367 = vmatprep.subr.bf16.mxu0 %v486_v0 }
  0x54   :  { %390 = vmatpush3.bf16.xpose.msra.mxu1 %v389_v37 }
  0x55   :  { %391 = vmatprep.subr.bf16.mxu1 %v486_v0 }
  0x5a   :  { %369 = vmatpush3.bf16.xpose.msra.mxu0 %v368_v42 }
  0x5b   :  { %370 = vmatprep.subr.bf16.mxu0 %v486_v0 }
  0x5c   :  { %393 = vmatpush3.bf16.xpose.msra.mxu1 %v392_v43 }
  0x5d   :  { %394 = vmatprep.subr.bf16.mxu1 %v486_v0 }
  0x62   :  { %372 = vmatpush3.bf16.xpose.msra.mxu0 %v371_v48 }
  0x64   :  { %396 = vmatpush3.bf16.xpose.msra.mxu1 %v395_v49 }
  0x69   :  { %312 = vmatmul.mubr.f32.vlgmr.msra.gmra.mrb[0].mxu0 %v54_v50 }
  0x6b   :  { %347 = vmatmul.mubr.f32.vlgmr.msra.gmra.mrb[0].mxu1 %v489_v51 }
 0x13c   :  { %v121_v52 = vpop.f32.mrb[0].mxu0 }
 0x13d   :  { %v313_v53 = vpop.f32.mrb[1].mxu0 }
 0x13e   :  { %v207_v54 = vpop.f32.mrb[0].mxu1 }
 0x13f   :  { %v211_v55 = vmax.f32 %v207_v54, 1e-24  ;;  %v348_v56 = vpop.f32.mrb[1].mxu1 }
 0x141   :  { %406 = vrsqrt.f32 %v211_v55 }
 0x14b   :  { %v407_v60 = vpop.eup %406 }
 0x14c   :  { %v216_v61 = vrot.slane %v407_v60, %v215_v59 }
 0x14e   :  { %v217_v62 = vmul.f32 %v216_v61, %v121_v52 }
 0x150   :  { %v218_v63 = vmul.f32 2.0, %v217_v62 }
 0x152   :  { %v219_v0 = vsub.f32 2.0, %v218_v63 }
 0x154   :  { %v220_v1 = vmax.f32 %v219_v0, 0.0 }
 0x156   :  { %408 = vrsqrt.f32 %v220_v1  ;;  %vm223_vm1 = vcmp.eq.f32.partialorder %v220_v1, inf  ;;  %v226_v4 = vand.u32 2147483648, %v220_v1  ;;  %vm225_vm2 = vcmp.eq.f32.partialorder %v220_v1, 0.0 }
 0x160   :  { %v409_v2 = vpop.eup %408 }
 0x161   :  { %v222_v3 = vmul.f32 %v409_v2, %v220_v1 }
 0x163   :  { %v224_v5 = vsel %vm223_vm1, %v220_v1, %v222_v3 }
 0x164   :  { %v227_v6 = vsel %vm225_vm2, %v226_v4, %v224_v5 }
 0x165   :  { %228 = vst [vmem:[#allocation7] sm:$0xf] %v227_v6 }
 0x166   :  { %465 = shalt.err (!%p462_p6)
}
 0x167   :  { %s466_s10 = scalar_lea.hbm %s560_s2, 64 }
 0x168   :  { %p467_p7 = scmp.ne.s32.totalorder %s560_s2, %s466_s10  ;;  %p470_p8 = scmp.lt.u32.totalorder %s466_s10, %s560_s2 }
 0x16a   :  { %p472_p9 = pnand %p470_p8, %p467_p7 }
 0x16c   :  { %475 = shalt.err (!%p472_p9)
}
 0x16d   :  { %238 = dma.vmem_to_hbm [thread:$0]  %s236_s6, 64, %s560_s2, [#allocation4]  }
 0x16e   :  { %480 = dma.done.wait [#allocation4], 64  }
 0x16f   :  { %481 = vsyncadd [#allocation4], 4294967232 }
 0x170   :  { %242 = vsyncpa [#allocation3], 1 }
 0x171   :  { %243 = vsyncpa [#allocation6], 1 }
 0x172   :  { %244 = vsyncpa [#allocation4], 1 }

</bundles_post_ra>
